<compile_context>
chip_gen: v5e
topology: v5e:2x2
jax: 0.10.0
libtpu: 0.0.40
codegen_flags: <defaults>
</compile_context>

<pallas_src>
import jax
import jax.numpy as jnp
from jax.experimental import pallas as pl
from jax.experimental.pallas import tpu as pltpu


def _round_up(n, m):
    return (n + m - 1) // m * m


def mlp_kernel(x_ref,
               w1_ref, b1_ref,
               w2_ref, b2_ref,
               w3_ref, b3_ref,
               w4t_ref, b4_ref,
               o_ref):
    # x_ref: (6, TB) — batch on the lane axis.
    x = x_ref[...]

    # fc1 + ReLU : (64, 6) @ (6, TB) -> (64, TB)
    h1 = jnp.dot(w1_ref[...], x, preferred_element_type=jnp.float32) + b1_ref[...]
    h1 = jnp.maximum(h1, 0.0)

    # fc2 + ReLU : (16, 64) @ (64, TB) -> (16, TB)
    h2 = jnp.dot(w2_ref[...], h1, preferred_element_type=jnp.float32) + b2_ref[...]
    h2 = jnp.maximum(h2, 0.0)

    # fc3 + ReLU : (8, 16) @ (16, TB) -> (8, TB)
    h3 = jnp.dot(w3_ref[...], h2, preferred_element_type=jnp.float32) + b3_ref[...]
    h3 = jnp.maximum(h3, 0.0)

    # fc4 (8 -> 1) + sigmoid on VPU/XLU: broadcast-multiply then sublane reduce.
    h4 = jnp.sum(w4t_ref[...] * h3, axis=0, keepdims=True) + b4_ref[...]   # (1, TB)
    o_ref[...] = jax.nn.sigmoid(h4)


def neural_network_forward(x, params, *, block_b=8192):
    """x: (B, 6) float32.  params in PyTorch layout: w (out, in), b (out,).

    Returns (B, 1) float32.  block_b is the batch tile (rows per grid step);
    8192 is a safe default even for v7x's 64 MiB VMEM — raise to 16K-32K on
    v5e/v6e for maximum per-step amortization.
    """
    (w1, b1), (w2, b2), (w3, b3), (w4, b4) = params
    B = x.shape[0]

    # Batch tile: multiple of 128 lanes, no larger than the padded batch.
    tb = _round_up(min(block_b, _round_up(B, 128)), 128)
    Bp = _round_up(B, tb)

    # Feature-major layout: (6, Bp), zero-padded rows are sliced off afterwards.
    xt = jnp.pad(x, ((0, Bp - B), (0, 0))).T

    # Column-vector biases broadcast along the lane (batch) axis inside the kernel.
    b1c = b1.reshape(-1, 1)
    b2c = b2.reshape(-1, 1)
    b3c = b3.reshape(-1, 1)
    w4t = w4.T                      # (8, 1)
    b4c = b4.reshape(1, 1)

    resident = lambda a: pl.BlockSpec(a.shape, lambda i: (0, 0))  # stays in VMEM across steps

    out = pl.pallas_call(
        mlp_kernel,
        out_shape=jax.ShapeDtypeStruct((1, Bp), jnp.float32),
        grid=(Bp // tb,),
        in_specs=[pl.BlockSpec((6, tb), lambda i: (0, i)),
                  resident(w1), resident(b1c),
                  resident(w2), resident(b2c),
                  resident(w3), resident(b3c),
                  resident(w4t), resident(b4c)],
        out_specs=pl.BlockSpec((1, tb), lambda i: (0, i)),
        compiler_params=pltpu.CompilerParams(
            dimension_semantics=("parallel",),
        ),
    )(xt, w1, b1c, w2, b2c, w3, b3c, w4t, b4c)

    return out[:, :B].T             # (B, 1)


def init_params(key):
    """PyTorch-layout params: w (out_features, in_features), b (out_features,).
    Uniform(-1/sqrt(fan_in), 1/sqrt(fan_in)) like nn.Linear's default init."""
    dims = [(6, 64), (64, 16), (16, 8), (8, 1)]
    params = []
    for fan_in, fan_out in dims:
        key, kw, kb = jax.random.split(key, 3)
        bound = 1.0 / jnp.sqrt(fan_in)
        w = jax.random.uniform(kw, (fan_out, fan_in), jnp.float32, -bound, bound)
        b = jax.random.uniform(kb, (fan_out,), jnp.float32, -bound, bound)
        params.append((w, b))
    return params


def reference_forward(x, params):
    h = x
    for i, (w, b) in enumerate(params):
        h = h @ w.T + b
        if i < 3:
            h = jnp.maximum(h, 0.0)
    return jax.nn.sigmoid(h)


if __name__ == "__main__":
    key = jax.random.PRNGKey(0)
    kx, kp = jax.random.split(key)

    # Batch deliberately not a multiple of 128 and > one tile so both padding
    # and multi-step grid pipelining are exercised.
    batch = 300
    x = jax.random.normal(kx, (batch, 6), jnp.float32)
    params = init_params(kp)

    out = neural_network_forward(x, params, block_b=128)   # 3 grid steps
    out = jax.block_until_ready(out)

    ref = reference_forward(x, params)
    assert out.shape == (batch, 1), out.shape
    assert jnp.allclose(out, ref, atol=1e-5, rtol=1e-5), float(jnp.max(jnp.abs(out - ref)))

    print("KERNEL_OK")
</pallas_src>

<mosaic_0001>
module attributes {stable_mosaic.version = 11 : i64} {
  func.func @mlp_kernel(%arg0: i32, %arg1: memref<6x128xf32, #tpu.memory_space<vmem>>, %arg2: memref<64x6xf32, #tpu.memory_space<vmem>>, %arg3: memref<64x1xf32, #tpu.memory_space<vmem>>, %arg4: memref<16x64xf32, #tpu.memory_space<vmem>>, %arg5: memref<16x1xf32, #tpu.memory_space<vmem>>, %arg6: memref<8x16xf32, #tpu.memory_space<vmem>>, %arg7: memref<8x1xf32, #tpu.memory_space<vmem>>, %arg8: memref<8x1xf32, #tpu.memory_space<vmem>>, %arg9: memref<1x1xf32, #tpu.memory_space<vmem>>, %arg10: memref<1x128xf32, #tpu.memory_space<vmem>>) attributes {dimension_semantics = [#tpu.dimension_semantics<parallel>], iteration_bounds = array<i64: 3>, scalar_prefetch = 0 : i64, scratch_operands = 0 : i64, tpu.core_type = #tpu.core_type<tc>, window_params = [{transform_indices = @transform_0, window_bounds = array<i64: 6, 128>}, {pipeline_mode = #tpu.pipeline_mode<synchronous>, transform_indices = @transform_1, window_bounds = array<i64: 64, 6>}, {pipeline_mode = #tpu.pipeline_mode<synchronous>, transform_indices = @transform_2, window_bounds = array<i64: 64, 1>}, {pipeline_mode = #tpu.pipeline_mode<synchronous>, transform_indices = @transform_3, window_bounds = array<i64: 16, 64>}, {pipeline_mode = #tpu.pipeline_mode<synchronous>, transform_indices = @transform_4, window_bounds = array<i64: 16, 1>}, {pipeline_mode = #tpu.pipeline_mode<synchronous>, transform_indices = @transform_5, window_bounds = array<i64: 8, 16>}, {pipeline_mode = #tpu.pipeline_mode<synchronous>, transform_indices = @transform_6, window_bounds = array<i64: 8, 1>}, {pipeline_mode = #tpu.pipeline_mode<synchronous>, transform_indices = @transform_7, window_bounds = array<i64: 8, 1>}, {pipeline_mode = #tpu.pipeline_mode<synchronous>, transform_indices = @transform_8, window_bounds = array<i64: 1, 1>}, {transform_indices = @transform_9, window_bounds = array<i64: 1, 128>}]} {
    %c0 = arith.constant 0 : index
    %c0_0 = arith.constant 0 : index
    %0 = vector.load %arg1[%c0, %c0_0] : memref<6x128xf32, #tpu.memory_space<vmem>>, vector<6x128xf32>
    %c0_1 = arith.constant 0 : index
    %c0_2 = arith.constant 0 : index
    %1 = vector.load %arg2[%c0_1, %c0_2] : memref<64x6xf32, #tpu.memory_space<vmem>>, vector<64x6xf32>
    %cst = arith.constant dense<0.000000e+00> : vector<64x128xf32>
    %2 = tpu.matmul %1, %0, %cst {dimension_numbers = #tpu.dot_dimension_numbers<[1], [0], [0], [1], [0, 0, 1, 1], [], []>} : vector<64x6xf32>, vector<6x128xf32>, vector<64x128xf32> -> vector<64x128xf32>
    %c0_3 = arith.constant 0 : index
    %c0_4 = arith.constant 0 : index
    %3 = vector.load %arg3[%c0_3, %c0_4] : memref<64x1xf32, #tpu.memory_space<vmem>>, vector<64x1xf32>
    %4 = vector.broadcast %3 : vector<64x1xf32> to vector<64x128xf32>
    %5 = arith.addf %2, %4 : vector<64x128xf32>
    %cst_5 = arith.constant 0.000000e+00 : f32
    %6 = vector.broadcast %cst_5 : f32 to vector<64x128xf32>
    %7 = arith.maximumf %5, %6 : vector<64x128xf32>
    %c0_6 = arith.constant 0 : index
    %c0_7 = arith.constant 0 : index
    %8 = vector.load %arg4[%c0_6, %c0_7] : memref<16x64xf32, #tpu.memory_space<vmem>>, vector<16x64xf32>
    %cst_8 = arith.constant dense<0.000000e+00> : vector<16x128xf32>
    %9 = tpu.matmul %8, %7, %cst_8 {dimension_numbers = #tpu.dot_dimension_numbers<[1], [0], [0], [1], [0, 0, 1, 1], [], []>} : vector<16x64xf32>, vector<64x128xf32>, vector<16x128xf32> -> vector<16x128xf32>
    %c0_9 = arith.constant 0 : index
    %c0_10 = arith.constant 0 : index
    %10 = vector.load %arg5[%c0_9, %c0_10] : memref<16x1xf32, #tpu.memory_space<vmem>>, vector<16x1xf32>
    %11 = vector.broadcast %10 : vector<16x1xf32> to vector<16x128xf32>
    %12 = arith.addf %9, %11 : vector<16x128xf32>
    %cst_11 = arith.constant 0.000000e+00 : f32
    %13 = vector.broadcast %cst_11 : f32 to vector<16x128xf32>
    %14 = arith.maximumf %12, %13 : vector<16x128xf32>
    %c0_12 = arith.constant 0 : index
    %c0_13 = arith.constant 0 : index
    %15 = vector.load %arg6[%c0_12, %c0_13] : memref<8x16xf32, #tpu.memory_space<vmem>>, vector<8x16xf32>
    %cst_14 = arith.constant dense<0.000000e+00> : vector<8x128xf32>
    %16 = tpu.matmul %15, %14, %cst_14 {dimension_numbers = #tpu.dot_dimension_numbers<[1], [0], [0], [1], [0, 0, 1, 1], [], []>} : vector<8x16xf32>, vector<16x128xf32>, vector<8x128xf32> -> vector<8x128xf32>
    %c0_15 = arith.constant 0 : index
    %c0_16 = arith.constant 0 : index
    %17 = vector.load %arg7[%c0_15, %c0_16] : memref<8x1xf32, #tpu.memory_space<vmem>>, vector<8x1xf32>
    %18 = vector.broadcast %17 : vector<8x1xf32> to vector<8x128xf32>
    %19 = arith.addf %16, %18 : vector<8x128xf32>
    %cst_17 = arith.constant 0.000000e+00 : f32
    %20 = vector.broadcast %cst_17 : f32 to vector<8x128xf32>
    %21 = arith.maximumf %19, %20 : vector<8x128xf32>
    %c0_18 = arith.constant 0 : index
    %c0_19 = arith.constant 0 : index
    %22 = vector.load %arg8[%c0_18, %c0_19] : memref<8x1xf32, #tpu.memory_space<vmem>>, vector<8x1xf32>
    %23 = vector.broadcast %22 : vector<8x1xf32> to vector<8x128xf32>
    %24 = arith.mulf %23, %21 : vector<8x128xf32>
    %cst_20 = arith.constant dense<0.000000e+00> : vector<128xf32>
    %25 = vector.multi_reduction <add>, %24, %cst_20 [0] : vector<8x128xf32> to vector<128xf32>
    %26 = vector.shape_cast %25 : vector<128xf32> to vector<1x128xf32>
    %c0_21 = arith.constant 0 : index
    %c0_22 = arith.constant 0 : index
    %27 = vector.load %arg9[%c0_21, %c0_22] : memref<1x1xf32, #tpu.memory_space<vmem>>, vector<1x1xf32>
    %28 = vector.broadcast %27 : vector<1x1xf32> to vector<1x128xf32>
    %29 = arith.addf %26, %28 : vector<1x128xf32>
    %30 = arith.negf %29 : vector<1x128xf32>
    %31 = math.exp %30 : vector<1x128xf32>
    %cst_23 = arith.constant 1.000000e+00 : f32
    %32 = vector.broadcast %cst_23 : f32 to vector<1x128xf32>
    %33 = arith.addf %32, %31 : vector<1x128xf32>
    %34 = arith.divf %32, %33 : vector<1x128xf32>
    %c0_24 = arith.constant 0 : index
    %c0_25 = arith.constant 0 : index
    %35 = vector.load %arg10[%c0_24, %c0_25] : memref<1x128xf32, #tpu.memory_space<vmem>>, vector<1x128xf32>
    tpu.vector_store %arg10[%c0_24, %c0_25], %34 {strides = array<i32>} : memref<1x128xf32, #tpu.memory_space<vmem>>, vector<1x128xf32>,
    return
  }
  func.func @transform_0(%arg0: i32) -> (i32, i32) {
    %c0_i32 = arith.constant 0 : i32
    %c0_i32_0 = arith.constant 0 : i32
    return %c0_i32, %arg0 : i32, i32
  }
  func.func @transform_1(%arg0: i32) -> (i32, i32) {
    %c0_i32 = arith.constant 0 : i32
    %c0_i32_0 = arith.constant 0 : i32
    %c0_i32_1 = arith.constant 0 : i32
    return %c0_i32, %c0_i32_0 : i32, i32
  }
  func.func @transform_2(%arg0: i32) -> (i32, i32) {
    %c0_i32 = arith.constant 0 : i32
    %c0_i32_0 = arith.constant 0 : i32
    %c0_i32_1 = arith.constant 0 : i32
    return %c0_i32, %c0_i32_0 : i32, i32
  }
  func.func @transform_3(%arg0: i32) -> (i32, i32) {
    %c0_i32 = arith.constant 0 : i32
    %c0_i32_0 = arith.constant 0 : i32
    %c0_i32_1 = arith.constant 0 : i32
    return %c0_i32, %c0_i32_0 : i32, i32
  }
  func.func @transform_4(%arg0: i32) -> (i32, i32) {
    %c0_i32 = arith.constant 0 : i32
    %c0_i32_0 = arith.constant 0 : i32
    %c0_i32_1 = arith.constant 0 : i32
    return %c0_i32, %c0_i32_0 : i32, i32
  }
  func.func @transform_5(%arg0: i32) -> (i32, i32) {
    %c0_i32 = arith.constant 0 : i32
    %c0_i32_0 = arith.constant 0 : i32
    %c0_i32_1 = arith.constant 0 : i32
    return %c0_i32, %c0_i32_0 : i32, i32
  }
  func.func @transform_6(%arg0: i32) -> (i32, i32) {
    %c0_i32 = arith.constant 0 : i32
    %c0_i32_0 = arith.constant 0 : i32
    %c0_i32_1 = arith.constant 0 : i32
    return %c0_i32, %c0_i32_0 : i32, i32
  }
  func.func @transform_7(%arg0: i32) -> (i32, i32) {
    %c0_i32 = arith.constant 0 : i32
    %c0_i32_0 = arith.constant 0 : i32
    %c0_i32_1 = arith.constant 0 : i32
    return %c0_i32, %c0_i32_0 : i32, i32
  }
  func.func @transform_8(%arg0: i32) -> (i32, i32) {
    %c0_i32 = arith.constant 0 : i32
    %c0_i32_0 = arith.constant 0 : i32
    %c0_i32_1 = arith.constant 0 : i32
    return %c0_i32, %c0_i32_0 : i32, i32
  }
  func.func @transform_9(%arg0: i32) -> (i32, i32) {
    %c0_i32 = arith.constant 0 : i32
    %c0_i32_0 = arith.constant 0 : i32
    return %c0_i32, %arg0 : i32, i32
  }
}

</mosaic_0001>

<bundles_post_ra>
// kernel: tpu_custom_call.1
= control target key start
LH: loop header
LB: loop body
LE: loop exit
PB: predicated region body
PF: predicated region fallthrough
CT: control target
= control target key end

     0   :  { %s999_s0 = inlined_call_operand.vmem [shape: f32[6,384], index: 0, kind: input, shape index: {}]   ;;  %s1000_s1 = inlined_call_operand.vmem [shape: f32[64,6], index: 1, kind: input, shape index: {}]   ;;  %s1001_s2 = inlined_call_operand.vmem [shape: f32[64,1], index: 2, kind: input, shape index: {}]   ;;  %s1002_s3 = inlined_call_operand.vmem [shape: f32[16,64], index: 3, kind: input, shape index: {}]   ;;  %s1003_s4 = inlined_call_operand.vmem [shape: f32[16,1], index: 4, kind: input, shape index: {}]   ;;  %s1004_s5 = inlined_call_operand.vmem [shape: f32[8,16], index: 5, kind: input, shape index: {}]   ;;  %s1005_s6 = inlined_call_operand.vmem [shape: f32[8,1], index: 6, kind: input, shape index: {}]   ;;  %s1006_s7 = inlined_call_operand.vmem [shape: f32[8,1], index: 7, kind: input, shape index: {}]   ;;  %s1007_s8 = inlined_call_operand.<no memory space> [shape: f32[1,1], index: 8, kind: input, shape index: {}]   ;;  %s1008_s9 = inlined_call_operand.hbm [shape: f32[1,384], index: 9, kind: output, shape index: {}]  }
   0x1   :  { %v14_v0 = vstv %s1007_s8 }
   0x2   :  { %15 = vst [vmem:[#allocation2] sm:$0x1] %v14_v0 }
   0x3   :  { %16 = vsyncpa [#allocation4], 0 }
   0x4   :  { %18 = vsyncpa [#allocation4 + $0x1], 0  ;;  %s837_s11 = smov 0   ;;  %s839_s12 = smov 0  }
   0x5   :  { %s841_s13 = smov 0   ;;  %s843_s14 = smov 0  }
   0x6 LB: > { %s858_s8 = sadd.s32 4294967295, %s781_s14   ;;  %s651_s15 = sadd.s32 4294967294, %s781_s14   ;;  %s781_s14 = sphi %s843_s14, %s1014_s14   ;;  %s777_s13 = sphi %s841_s13, %s1013_s13   ;;  %s773_s12 = sphi %s839_s12, %s1012_s12   ;;  %s769_s11 = sphi %s837_s11, %s1011_s11  }
   0x7   : > { %s862_s16 = sadd.s32 1, %s781_s14   ;;  %s225_s17 = sadd.s32 1, %s777_s13 }
   0x8   : > { %s222_s18 = ssub.s32 %s781_s14, %s862_s16  ;;  %p235_p0 = scmp.ne.s32.totalorder %s777_s13, %s773_s12 }
   0x9   : > { %p223_p1 = scmp.eq.s32.totalorder %s222_s18, 0  ;;  %p236_p2 = scmp.eq.s32.totalorder %s858_s8, 2 }
   0xa   : > { %p241_p3 = scmp.ne.s32.totalorder %s773_s12, %s769_s11  ;;  %p242_p4 = scmp.eq.s32.totalorder %s651_s15, 2 }
   0xb   : > { %s873_s19 = scalar_select %p223_p1, %s777_s13, %s225_s17  }
   0xc   : > { %p875_p5 = por %p236_p2, %p235_p0  ;;  %p879_p6 = por %p242_p4, %p241_p3 }
   0xd   : > { %p654_p7 = scmp.ge.s32.totalorder %s781_s14, 1  ;;  %p291_p8 = scmp.lt.s32.totalorder %s781_s14, 4 }
   0xf   : > { %p292_p9 = pnand %p654_p7, %p291_p8 }
  0x10   : > { %p325_p10 = scmp.lt.s32.totalorder (!%p292_p9), %s858_s8, 2  ;;  %s323_s18 = sand.u32 (!%p292_p9), 1, %s773_s12  }
  0x11   : > { %295 = sbr.rel (%p292_p9) target bundleno = 527 (0x20f), region = 56  ;;  %s592_s24 = scalar_lea.hbm (!%p292_p9), %s1008_s9, %s858_s8 }
  0x12   : > { %s324_s25 = scalar_lea.vmem (!%p292_p9), [#allocation3], %s323_s18  ;;  %s584_s28 = scalar_lea.sflag (!%p292_p9), [#allocation4], %s323_s18 }
  0x13   : > { %s739_s15 = scalar_lea.hbm (!%p292_p9), %s1008_s9, 3 }
  0x16   : > { %v345_v1 = vld [vmem:[%s1001_s2 + $0x38] sm:$0xff]  ;;  %v783_v2 = vmov 0   ;;  %v343_v3 = vld [vmem:[%s1001_s2 + $0x28] sm:$0xff]  ;;  %s326_s26 = scalar_select %p325_p10, %s858_s8, 2  ;;  %vm411_vm0 = vcmask 1045504   ;;  %v334_v4 = vld [vmem:[%s1000_s1 + $0x20] sm:$0xff] }
  0x17   : > { %712 = vset.pattern.permute.xlu0 %v783_v2  ;;  %713 = vset.pattern.permute.xlu1 %v783_v2  ;;  %vm386_vm1 = vcmask 48128   ;;  %v330_v5 = vld [vmem:[%s1000_s1] sm:$0xff]  ;;  %v341_v7 = vld [vmem:[%s1001_s2 + $0x18] sm:$0xff]  ;;  %v344_v8 = vld [vmem:[%s1001_s2 + $0x30] sm:$0xff]  ;;  %vm478_vm2 = vcmask 523264   ;;  %vm517_vm3 = vcmask 130048  }
  0x18   : > { %383 = vperm.xlu0 %712, %v345_v1   ;;  %373 = vperm.xlu1 %713, %v343_v3   ;;  %s655_s27 = sshll.u32 %s326_s26, 3  ;;  %v342_v9 = vld [vmem:[%s1001_s2 + $0x20] sm:$0xff]  ;;  %v335_v10 = vld [vmem:[%s1000_s1 + $0x28] sm:$0xff]  ;;  %v340_v12 = vld [vmem:[%s1001_s2 + $0x10] sm:$0xff]  ;;  %s594_s26 = sshll.u32 %s324_s25, 4  ;;  %s595_s26 = int_to_ptr.vmem [resolvable:$true] %s594_s26 }
  0x19   : > { %714 = vset.pattern.permute.xlu2 %v783_v2  ;;  %s328_s30 = scalar_lea.vmem %s999_s0, %s655_s27  ;;  %v331_v11 = vld [vmem:[%s1000_s1 + $0x8] sm:$0xff]  ;;  %v338_v14 = vld [vmem:[%s1001_s2] sm:$0xff]  ;;  %v336_v15 = vld [vmem:[%s1000_s1 + $0x30] sm:$0xff]  ;;  %s596_s27 = sshll.u32 %s592_s24, 4  ;;  %s597_s27 = int_to_ptr.hbm [resolvable:$true] %s596_s27 }
  0x1a   : > { %v329_v6 = vld [vmem:[%s328_s30] sm:$0x3f]  ;;  %363 = vperm.xlu2 %714, %v341_v7   ;;  %v339_v13 = vld [vmem:[%s1001_s2 + $0x8] sm:$0xff]  ;;  %v332_v16 = vld [vmem:[%s1000_s1 + $0x10] sm:$0xff]  ;;  %s733_s8 = sshra.s32 %s597_s27, 4  ;;  %s734_s8 = int_to_ptr.hbm [resolvable:$true] %s733_s8 }
  0x1b   : > { %671 = vmatpush.msk.msra.mxu3 %vm411_vm0, %v329_v6  ;;  %656 = vmatpush.msk.msra.mxu0 %vm411_vm0, %v329_v6  ;;  %v467_v17 = vld [vmem:[%s1003_s4 + $0x8] sm:$0xff]  ;;  %v466_v18 = vld [vmem:[%s1003_s4] sm:$0xff]  ;;  %v337_v20 = vld [vmem:[%s1000_s1 + $0x38] sm:$0xff]  ;;  %s735_s29 = scalar_lea.hbm %s734_s8, 1  ;;  %p740_p0 = scmp.lt.s32.totalorder %s734_s8, %s1008_s9 }
  0x1c   : > { %661 = vmatmul.msk.f32.vlgmr.msra.gmra.mxu3 %vm386_vm1, %v334_v4  ;;  %657 = vmatmul.msk.f32.vlgmr.msra.gmra.mxu0 %vm386_vm1, %v330_v5  ;;  %v511_v19 = vld [vmem:[%s1005_s6] sm:$0xff]  ;;  %v333_v21 = vld [vmem:[%s1000_s1 + $0x18] sm:$0xff]  ;;  %v465_v57 = vld [vmem:[%s1002_s3 + $0x8] sm:$0xff]  ;;  %p736_p11 = scmp.ne.s32.totalorder %s734_s8, %s735_s29  ;;  %p741_p1 = scmp.lt.s32.totalorder %s739_s15, %s735_s29 }
  0x1d   : > { %v542_v22 = vld [vmem:[%s1006_s7] sm:$0xff] }
  0x1e   : > { %v555_v23 = vld [vmem:[#allocation2] sm:$0x1]  ;;  %p737_p12 = pnand %p736_p11, %p875_p5  ;;  %p742_p2 = por %p741_p1, %p740_p0 }
  0x1f   : > { %v464_v56 = vld [vmem:[%s1002_s3] sm:$0xff] }
  0x20   : > { %378 = vperm.xlu0 %712, %v344_v8   ;;  %368 = vperm.xlu1 %713, %v342_v9   ;;  %v510_v2 = vld [vmem:[%s1004_s5] sm:$0xff]  ;;  %p738_p13 = pneg %p737_p12 }
  0x22   : > { %358 = vperm.xlu2 %714, %v340_v12   ;;  %p743_p3 = pnand %p742_p2, %p738_p13 }
  0x24   : > { %662 = vmatmul.msk.f32.gmra.mxu3 %vm386_vm1, %v335_v10  ;;  %658 = vmatmul.msk.f32.gmra.mxu0 %vm386_vm1, %v331_v11 }
  0x28   : > { %353 = vperm.xlu0 %712, %v339_v13   ;;  %348 = vperm.xlu1 %713, %v338_v14  }
  0x2a   : > { %475 = vperm.xlu2 %714, %v467_v17  }
  0x2c   : > { %663 = vmatmul.msk.f32.gmra.mxu3 %vm386_vm1, %v336_v15  ;;  %659 = vmatmul.msk.f32.gmra.mxu0 %vm386_vm1, %v332_v16 }
  0x30   : > { %470 = vperm.xlu0 %712, %v466_v18   ;;  %514 = vperm.xlu1 %713, %v511_v19  }
  0x32   : > { %545 = vperm.xlu2 %714, %v542_v22  }
  0x34   : > { %664 = vmatmul.msk.f32.gmra.mxu3 %vm386_vm1, %v337_v20  ;;  %660 = vmatmul.msk.f32.gmra.mxu0 %vm386_vm1, %v333_v21 }
  0x38   : > { %558 = vperm.xlu0 %712, %v555_v23  }
  0x74   : > { %v364_v32 = vpop.permute.xlu2 %363 }
  0x7c   : > { %v359_v45 = vpop.permute.xlu2 %358 }
  0x84   : > { %v476_v59 = vpop.permute.xlu2 %475 }
  0x8a   : > { %v384_v28 = vpop.permute.xlu0 %383  ;;  %v374_v29 = vpop.permute.xlu1 %373 }
  0x8c   : > { %v546_v7 = vpop.permute.xlu2 %545 }
  0x92   : > { %v379_v33 = vpop.permute.xlu0 %378  ;;  %v369_v34 = vpop.permute.xlu1 %368 }
  0x99   : > { %v432_v24 = vpop.f32.mrf.mxu0 }
  0x9a   : > { %v354_v48 = vpop.permute.xlu0 %353  ;;  %v349_v49 = vpop.permute.xlu1 %348 }
  0x9b   : > { %v433_v52 = vadd.f32 %v432_v24, %v349_v49 }
  0x9d   : > { %v456_v55 = vmax.f32 %v433_v52, 0.0 }
  0x9f   : > { %v444_v25 = vpop.f32.mrf.mxu3 }
  0xa0   : > { %v445_v41 = vadd.f32 %v444_v25, %v369_v34 }
  0xa1   : > { %v435_v27 = vpop.f32.mrf.mxu0 }
  0xa2   : > { %v460_v46 = vmax.f32 %v445_v41, 0.0  ;;  %v436_v50 = vadd.f32 %v435_v27, %v354_v48  ;;  %v471_v60 = vpop.permute.xlu0 %470  ;;  %v515_v3 = vpop.permute.xlu1 %514 }
  0xa4   : > { %v457_v54 = vmax.f32 %v436_v50, 0.0 }
  0xa7   : > { %v447_v26 = vpop.f32.mrf.mxu3 }
  0xa8   : > { %v448_v38 = vadd.f32 %v447_v26, %v374_v29 }
  0xa9   : > { %v438_v31 = vpop.f32.mrf.mxu0 }
  0xaa   : > { %v461_v43 = vmax.f32 %v448_v38, 0.0  ;;  %v439_v47 = vadd.f32 %v438_v31, %v359_v45  ;;  %v559_v13 = vpop.permute.xlu0 %558 }
  0xab   : > { %v561_v15 = vperm.slane %v559_v13, 0 }
  0xac   : > { %v458_v53 = vmax.f32 %v439_v47, 0.0 }
  0xaf   : > { %v450_v30 = vpop.f32.mrf.mxu3 }
  0xb0   : > { %v451_v36 = vadd.f32 %v450_v30, %v379_v33 }
  0xb1   : > { %v441_v40 = vpop.f32.mrf.mxu0 }
  0xb2   : > { %v462_v42 = vmax.f32 %v451_v36, 0.0  ;;  %v442_v44 = vadd.f32 %v441_v40, %v364_v32 }
  0xb4   : > { %v459_v51 = vmax.f32 %v442_v44, 0.0 }
  0xb7   : > { %v453_v35 = vpop.f32.mrf.mxu3 }
  0xb8   : > { %v454_v37 = vadd.f32 %v453_v35, %v384_v28 }
  0xba   : > { %v463_v39 = vmax.f32 %v454_v37, 0.0 }
  0xbc   : > { %493 = vmatpush.msra.mxu1 %v463_v39 }
  0xbe   : > { %494 = vmatpush.msra.mxu1 %v462_v42 }
  0xc0   : > { %495 = vmatpush.msra.mxu1 %v461_v43 }
  0xc2   : > { %496 = vmatpush.msra.mxu1 %v460_v46 }
  0xc4   : > { %497 = vmatpush.msra.mxu1 %v459_v51 }
  0xc6   : > { %498 = vmatpush.msra.mxu1 %v458_v53 }
  0xc8   : > { %499 = vmatpush.msra.mxu1 %v457_v54 }
  0xca   : > { %500 = vmatpush.msra.mxu1 %v456_v55 }
  0xcb   : > { %665 = vmatmul.msk.f32.vlgmr.msra.gmra.mxu1 %vm478_vm2, %v464_v56 }
  0xd3   : > { %666 = vmatmul.msk.f32.gmra.mxu1 %vm478_vm2, %v465_v57 }
 0x148   : > { %v502_v58 = vpop.f32.mrf.mxu1 }
 0x149   : > { %v503_v62 = vadd.f32 %v502_v58, %v471_v60 }
 0x14b   : > { %v508_v1 = vmax.f32 %v503_v62, 0.0 }
 0x150   : > { %v505_v61 = vpop.f32.mrf.mxu1 }
 0x151   : > { %v506_v63 = vadd.f32 %v505_v61, %v476_v59 }
 0x153   : > { %v509_v0 = vmax.f32 %v506_v63, 0.0 }
 0x155   : > { %535 = vmatpush.msra.mxu2 %v509_v0 }
 0x157   : > { %536 = vmatpush.msra.mxu2 %v508_v1 }
 0x158   : > { %667 = vmatmul.msk.f32.vlgmr.msra.gmra.mxu2 %vm517_vm3, %v510_v2 }
 0x1db   : > { %v538_v4 = vpop.f32.mrf.mxu2 }
 0x1dc   : > { %v539_v5 = vadd.f32 %v538_v4, %v515_v3 }
 0x1de   : > { %v541_v6 = vmax.f32 %v539_v5, 0.0 }
 0x1e0   : > { %v548_v8 = vmul.f32 %v546_v7, %v541_v6 }
 0x1e2   : > { %v549_v9 = vrot.slane %v548_v8, 4 }
 0x1e4   : > { %v550_v10 = vadd.f32 %v549_v9, %v548_v8 }
 0x1e6   : > { %v551_v11 = vrot.slane %v550_v10, 2 }
 0x1e8   : > { %v552_v12 = vadd.f32 %v551_v11, %v550_v10 }
 0x1ea   : > { %v553_v14 = vrot.slane %v552_v12, 1 }
 0x1ec   : > { %v554_v16 = vadd.f32 %v553_v14, %v552_v12 }
 0x1ee   : > { %v562_v17 = vadd.f32 %v561_v15, %v554_v16 }
 0x1f0   : > { %v668_v18 = vmul.f32 -1.442695, %v562_v17 }
 0x1f2   : > { %715 = vpow2.f32 %v668_v18 }
 0x1f8   : > { %v716_v19 = vpop.eup %715 }
 0x1f9   : > { %v566_v20 = vadd.f32 1.0, %v716_v19 }
 0x1fb   : > { %717 = vrcp.f32 %v566_v20  ;;  %v578_v24 = vand.u32 2147483648, %v566_v20  ;;  %v576_v26 = vand.u32 2147483647, %v566_v20  ;;  %vm572_vm5 = vweird.f32 %v566_v20 }
 0x1fd   : > { %v579_v28 = vor.u32 1.1754944e-38, %v578_v24  ;;  %vm577_vm7 = vcmp.eq.f32.partialorder %v576_v26, 8.507059e+37 }
 0x201   : > { %v718_v21 = vpop.eup %717 }
 0x202   : > { %v568_v22 = vmul.f32 %v718_v21, %v566_v20  ;;  %vm573_vm4 = vweird.f32 %v718_v21 }
 0x203   : > { %vm574_vm6 = vmor %vm572_vm5, %vm573_vm4 }
 0x204   : > { %v569_v23 = vsub.f32 1.0, %v568_v22 }
 0x206   : > { %v570_v25 = vmul.f32 %v718_v21, %v569_v23 }
 0x208   : > { %v571_v27 = vadd.f32 %v718_v21, %v570_v25 }
 0x20a   : > { %v575_v29 = vsel %vm574_vm6, %v718_v21, %v571_v27 }
 0x20b   : > { %v580_v30 = vsel %vm577_vm7, %v579_v28, %v575_v29 }
 0x20c   : > { %582 = vst [vmem:[%s324_s25] sm:$0x1] %v580_v30 }
 0x20d   : > { %746 = shalt.err (!%p743_p3)
}
 0x20e   : > { %672 = dma.vmem_to_hbm [thread:$0]  (%p875_p5), %s595_s26, 16, %s597_s27, %s584_s28  }
 0x20f PF: > { %p678_p4 = scmp.ge.s32.totalorder %s781_s14, 2  ;;  %s608_s18 = sand.u32 1, %s769_s11  }
 0x210   : > { %s609_s23 = scalar_lea.sflag [#allocation4], %s608_s18 }
 0x211   : > { %p675_p7 = pnand %p678_p4, %p879_p6 }
 0x213   : > { %p676_p8 = pneg %p675_p7 }
 0x215   : > { %764 = dma.done.wait (%p676_p8), %s609_s23, 16  }
 0x216   : > { %766 = vsyncadd (%p676_p8), %s609_s23, 4294967280  ;;  %p21_p9 = scmp.ge.s32.totalorder %s862_s16, 5   ;;  %s1011_s11 = smov %s773_s12 }
 0x217   : > { %s1012_s12 = smov %s777_s13  ;;  %s1013_s13 = smov %s873_s19 }
 0x218   : > { %s1014_s14 = smov %s862_s16  ;;  %23 = sbr.rel (!%p21_p9) target bundleno = 6 (0x6), region = 91 }
 0x21d   :  { %614 = vsyncpa [#allocation4], 1 }
 0x21e   :  { %616 = vsyncpa [#allocation4 + $0x1], 1 }

</bundles_post_ra>
